<compile_context>
chip_gen: v6e
topology: v6e:2x2x1
jax: 0.10.0
libtpu: 0.0.40
codegen_flags: <defaults>
</compile_context>

<pallas_src>
import functools

import jax
import jax.numpy as jnp
from jax import lax
from jax.experimental import pallas as pl
from jax.experimental.pallas import tpu as pltpu


# ----------------------------- fused kernel -------------------------------- #

def _mha_fused_kernel(x_ref, w_qkv_ref, w_proj_ref, b_proj_ref, o_ref,
                      heads_ref, *, num_heads, head_size, compute_dtype):
    """One batch element of multi-head causal attention + output projection.

    x_ref     : (1, T, C)   input embeddings for this batch element
    w_qkv_ref : (C, 3*C)    stacked per-head QKV weights, layout [Q | K | V],
                            each block ordered head-major along the out dim
    w_proj_ref: (C, C)      output projection weight ((in, out) layout)
    b_proj_ref: (1, C)      output projection bias
    o_ref     : (1, T, C)   projected output
    heads_ref : (T, C) f32  VMEM scratch holding the concatenated head outputs
    """
    H, hs = num_heads, head_size
    x = x_ref[0]                                   # (T, C)
    T, C = x.shape

    # --- one wide QKV matmul: (T, C) @ (C, 3C) -> (T, 3C), f32 accumulation ---
    qkv = jnp.dot(x, w_qkv_ref[...], preferred_element_type=jnp.float32)

    # NB: the PyTorch module scales by C ** -0.5 with C = n_embd (not head_size).
    scale = C ** -0.5

    # causal mask, hoisted out of the head loop
    row = lax.broadcasted_iota(jnp.int32, (T, T), 0)
    col = lax.broadcasted_iota(jnp.int32, (T, T), 1)
    causal = row >= col

    for h in range(H):                             # H is static -> unrolled
        # scale folded into q (T*hs mults instead of T*T on the score tile)
        q = (qkv[:, h * hs:(h + 1) * hs] * scale).astype(compute_dtype)
        k = qkv[:, C + h * hs:C + (h + 1) * hs].astype(compute_dtype)
        v = qkv[:, 2 * C + h * hs:2 * C + (h + 1) * hs].astype(compute_dtype)

        # q @ k^T without materializing the transpose of k
        scores = lax.dot_general(q, k, (((1,), (1,)), ((), ())),
                                 preferred_element_type=jnp.float32)  # (T, T)
        scores = jnp.where(causal, scores, -jnp.inf)

        # numerically-stable softmax; divide goes to the EUP via reciprocal
        m = jnp.max(scores, axis=-1, keepdims=True)
        e = jnp.exp(scores - m)
        l = jnp.sum(e, axis=-1, keepdims=True)
        wei = (e * pl.reciprocal(l, approx=True)).astype(compute_dtype)
        # (attention-weight dropout skipped: eval mode)

        heads_ref[:, h * hs:(h + 1) * hs] = jnp.dot(
            wei, v, preferred_element_type=jnp.float32)

    # --- fused output projection: (T, C) @ (C, C) + (1, C) ---
    y = heads_ref[...].astype(compute_dtype)
    out = jnp.dot(y, w_proj_ref[...], preferred_element_type=jnp.float32)
    o_ref[0] = out + b_proj_ref[...]               # bias broadcasts over rows
    # (output dropout skipped: eval mode)


# ----------------------------- wrapper ------------------------------------- #

@functools.partial(jax.jit,
                   static_argnames=("num_heads", "head_size", "compute_dtype"))
def multi_head_attention(x, w_qkv, w_proj, b_proj, *, num_heads, head_size,
                         compute_dtype=jnp.float32):
    """x: (B, T, C); w_qkv: (C, 3C); w_proj: (C, C); b_proj: (1, C).

    compute_dtype: operand dtype for the matmuls (f32 accumulation always).
    Use jnp.bfloat16 on v6e/v7x for MXU throughput; f32 default keeps exact
    parity with the fp32 reference.
    """
    B, T, C = x.shape
    H, hs = num_heads, head_size
    assert H * hs == C
    assert w_qkv.shape == (C, 3 * C)

    kernel = functools.partial(_mha_fused_kernel, num_heads=H, head_size=hs,
                               compute_dtype=compute_dtype)

    # Cast matmul operands once on the host side (no-op for f32 default).
    x_c = x.astype(compute_dtype)
    w_qkv_c = w_qkv.astype(compute_dtype)
    w_proj_c = w_proj.astype(compute_dtype)

    # Advisory cost estimate so XLA schedules surrounding ops sensibly.
    flops = (2 * B * T * C * (3 * C)        # QKV matmul
             + 4 * B * H * T * T * hs       # scores + weighted value
             + 2 * B * T * C * C)           # projection
    bytes_accessed = 4 * (B * T * C          # x
                          + C * 3 * C        # w_qkv
                          + C * C + C        # w_proj + bias
                          + B * T * C)       # output
    cost = pl.CostEstimate(flops=flops,
                           transcendentals=B * H * T * T,
                           bytes_accessed=bytes_accessed)

    return pl.pallas_call(
        kernel,
        out_shape=jax.ShapeDtypeStruct((B, T, C), jnp.float32),
        grid_spec=pltpu.PrefetchScalarGridSpec(
            num_scalar_prefetch=0,
            grid=(B,),
            in_specs=[
                pl.BlockSpec((1, T, C), lambda b: (b, 0, 0)),     # x
                pl.BlockSpec((C, 3 * C), lambda b: (0, 0)),       # w_qkv (resident)
                pl.BlockSpec((C, C), lambda b: (0, 0)),           # w_proj (resident)
                pl.BlockSpec((1, C), lambda b: (0, 0)),           # b_proj (resident)
            ],
            out_specs=pl.BlockSpec((1, T, C), lambda b: (b, 0, 0)),
            scratch_shapes=[pltpu.VMEM((T, C), jnp.float32)],     # concat heads
        ),
        compiler_params=pltpu.CompilerParams(
            dimension_semantics=("parallel",)),
        cost_estimate=cost,
    )(x_c, w_qkv_c, w_proj_c, b_proj)


# --------------------------- pure-JAX reference ----------------------------- #

def _reference(x, wq, wk, wv, w_proj, b_proj):
    B, T, C = x.shape
    heads = []
    for h in range(wq.shape[0]):
        q = x @ wq[h]
        k = x @ wk[h]
        v = x @ wv[h]
        wei = (q @ jnp.swapaxes(k, -1, -2)) * (C ** -0.5)
        mask = jnp.tril(jnp.ones((T, T), dtype=bool))
        wei = jnp.where(mask, wei, -jnp.inf)
        wei = jax.nn.softmax(wei, axis=-1)
        heads.append(wei @ v)
    cat = jnp.concatenate(heads, axis=-1)
    return cat @ w_proj + b_proj[0]


# --------------------------------- main ------------------------------------- #

if __name__ == "__main__":
    # Small config consistent with the module (n_embd = n_head * head_size).
    B, T = 2, 16           # batch, sequence (<= block_size)
    H, hs = 4, 8           # num_heads, head_size
    C = H * hs             # n_embd = 32

    key = jax.random.PRNGKey(0)
    k_x, k_q, k_k, k_v, k_w, k_b = jax.random.split(key, 6)

    x = jax.random.normal(k_x, (B, T, C), dtype=jnp.float32)

    # Deterministic parameter init (Linear weights stored (in, out) == W.T).
    scale = C ** -0.5
    wq = jax.random.normal(k_q, (H, C, hs), dtype=jnp.float32) * scale
    wk = jax.random.normal(k_k, (H, C, hs), dtype=jnp.float32) * scale
    wv = jax.random.normal(k_v, (H, C, hs), dtype=jnp.float32) * scale
    w_proj = jax.random.normal(k_w, (C, C), dtype=jnp.float32) * scale
    b_proj = jax.random.normal(k_b, (1, C), dtype=jnp.float32) * 0.01

    # Stack per-head weights into one (C, 3C) matrix: [Q heads | K heads | V heads].
    wq_cat = jnp.transpose(wq, (1, 0, 2)).reshape(C, H * hs)
    wk_cat = jnp.transpose(wk, (1, 0, 2)).reshape(C, H * hs)
    wv_cat = jnp.transpose(wv, (1, 0, 2)).reshape(C, H * hs)
    w_qkv = jnp.concatenate([wq_cat, wk_cat, wv_cat], axis=1)   # (C, 3C)

    out = multi_head_attention(x, w_qkv, w_proj, b_proj,
                               num_heads=H, head_size=hs)
    out = jax.block_until_ready(out)

    ref = _reference(x, wq, wk, wv, w_proj, b_proj)
    assert out.shape == (B, T, C)
    # Tolerance accounts for the approximate (EUP) reciprocal in the softmax.
    assert jnp.allclose(out, ref, atol=1e-2, rtol=1e-2), "mismatch vs reference"

    print("KERNEL_OK")
</pallas_src>

<mosaic_0001>
module attributes {stable_mosaic.version = 11 : i64} {
  func.func @_mha_fused_kernel(%arg0: i32, %arg1: memref<1x16x32xf32, #tpu.memory_space<vmem>>, %arg2: memref<32x96xf32, #tpu.memory_space<vmem>>, %arg3: memref<32x32xf32, #tpu.memory_space<vmem>>, %arg4: memref<1x32xf32, #tpu.memory_space<vmem>>, %arg5: memref<1x16x32xf32, #tpu.memory_space<vmem>>, %arg6: memref<16x32xf32, #tpu.memory_space<vmem>>) attributes {dimension_semantics = [#tpu.dimension_semantics<parallel>], iteration_bounds = array<i64: 2>, scalar_prefetch = 0 : i64, scratch_operands = 1 : i64, tpu.core_type = #tpu.core_type<tc>, window_params = [{transform_indices = @transform_0, window_bounds = array<i64: 1, 16, 32>}, {pipeline_mode = #tpu.pipeline_mode<synchronous>, transform_indices = @transform_1, window_bounds = array<i64: 32, 96>}, {pipeline_mode = #tpu.pipeline_mode<synchronous>, transform_indices = @transform_2, window_bounds = array<i64: 32, 32>}, {pipeline_mode = #tpu.pipeline_mode<synchronous>, transform_indices = @transform_3, window_bounds = array<i64: 1, 32>}, {transform_indices = @transform_4, window_bounds = array<i64: 1, 16, 32>}]} {
    %c0 = arith.constant 0 : index
    %c0_0 = arith.constant 0 : index
    %c0_1 = arith.constant 0 : index
    %0 = vector.load %arg1[%c0, %c0_0, %c0_1] : memref<1x16x32xf32, #tpu.memory_space<vmem>>, vector<1x16x32xf32>
    %1 = vector.shape_cast %0 : vector<1x16x32xf32> to vector<16x32xf32>
    %c0_2 = arith.constant 0 : index
    %c0_3 = arith.constant 0 : index
    %2 = vector.load %arg2[%c0_2, %c0_3] : memref<32x96xf32, #tpu.memory_space<vmem>>, vector<32x96xf32>
    %cst = arith.constant dense<0.000000e+00> : vector<16x96xf32>
    %3 = tpu.matmul %1, %2, %cst {dimension_numbers = #tpu.dot_dimension_numbers<[1], [0], [0], [1], [0, 0, 1, 1], [], []>} : vector<16x32xf32>, vector<32x96xf32>, vector<16x96xf32> -> vector<16x96xf32>
    %4 = tpu.iota {dimensions = array<i32: 0>} : vector<16x16xi32>
    %5 = tpu.iota {dimensions = array<i32: 1>} : vector<16x16xi32>
    %6 = arith.cmpi sge, %4, %5 : vector<16x16xi32>
    %7 = vector.extract_strided_slice %3 {offsets = [0, 0], sizes = [16, 8], strides = [1, 1]} : vector<16x96xf32> to vector<16x8xf32>
    %cst_4 = arith.constant 0.176776692 : f32
    %8 = vector.broadcast %cst_4 : f32 to vector<16x8xf32>
    %9 = arith.mulf %7, %8 : vector<16x8xf32>
    %10 = vector.extract_strided_slice %3 {offsets = [0, 32], sizes = [16, 8], strides = [1, 1]} : vector<16x96xf32> to vector<16x8xf32>
    %11 = vector.extract_strided_slice %3 {offsets = [0, 64], sizes = [16, 8], strides = [1, 1]} : vector<16x96xf32> to vector<16x8xf32>
    %cst_5 = arith.constant dense<0.000000e+00> : vector<16x16xf32>
    %12 = tpu.matmul %9, %10, %cst_5 {dimension_numbers = #tpu.dot_dimension_numbers<[1], [1], [0], [0], [0, 0, 1, 0], [], []>} : vector<16x8xf32>, vector<16x8xf32>, vector<16x16xf32> -> vector<16x16xf32>
    %cst_6 = arith.constant 0xFF800000 : f32
    %13 = vector.broadcast %cst_6 : f32 to vector<16x16xf32>
    %14 = arith.select %6, %12, %13 : vector<16x16xi1>, vector<16x16xf32>
    %cst_7 = arith.constant dense<0xFF800000> : vector<16xf32>
    %15 = vector.multi_reduction <maximumf>, %14, %cst_7 [1] : vector<16x16xf32> to vector<16xf32>
    %16 = vector.shape_cast %15 : vector<16xf32> to vector<16x1xf32>
    %17 = vector.broadcast %16 : vector<16x1xf32> to vector<16x16xf32>
    %18 = arith.subf %14, %17 : vector<16x16xf32>
    %19 = math.exp %18 : vector<16x16xf32>
    %cst_8 = arith.constant dense<0.000000e+00> : vector<16xf32>
    %20 = vector.multi_reduction <add>, %19, %cst_8 [1] : vector<16x16xf32> to vector<16xf32>
    %21 = vector.shape_cast %20 : vector<16xf32> to vector<16x1xf32>
    %22 = tpu.reciprocal %21 {approx = true} : vector<16x1xf32> -> vector<16x1xf32>
    %23 = vector.broadcast %22 : vector<16x1xf32> to vector<16x16xf32>
    %24 = arith.mulf %19, %23 : vector<16x16xf32>
    %cst_9 = arith.constant dense<0.000000e+00> : vector<16x8xf32>
    %25 = tpu.matmul %24, %11, %cst_9 {dimension_numbers = #tpu.dot_dimension_numbers<[1], [0], [0], [1], [0, 0, 1, 1], [], []>} : vector<16x16xf32>, vector<16x8xf32>, vector<16x8xf32> -> vector<16x8xf32>
    %c0_10 = arith.constant 0 : index
    %c0_11 = arith.constant 0 : index
    %26 = vector.load %arg6[%c0_10, %c0_11] : memref<16x32xf32, #tpu.memory_space<vmem>>, vector<16x8xf32>
    tpu.vector_store %arg6[%c0_10, %c0_11], %25 {strides = array<i32>} : memref<16x32xf32, #tpu.memory_space<vmem>>, vector<16x8xf32>,
    %27 = vector.extract_strided_slice %3 {offsets = [0, 8], sizes = [16, 8], strides = [1, 1]} : vector<16x96xf32> to vector<16x8xf32>
    %cst_12 = arith.constant 0.176776692 : f32
    %28 = vector.broadcast %cst_12 : f32 to vector<16x8xf32>
    %29 = arith.mulf %27, %28 : vector<16x8xf32>
    %30 = vector.extract_strided_slice %3 {offsets = [0, 40], sizes = [16, 8], strides = [1, 1]} : vector<16x96xf32> to vector<16x8xf32>
    %31 = vector.extract_strided_slice %3 {offsets = [0, 72], sizes = [16, 8], strides = [1, 1]} : vector<16x96xf32> to vector<16x8xf32>
    %cst_13 = arith.constant dense<0.000000e+00> : vector<16x16xf32>
    %32 = tpu.matmul %29, %30, %cst_13 {dimension_numbers = #tpu.dot_dimension_numbers<[1], [1], [0], [0], [0, 0, 1, 0], [], []>} : vector<16x8xf32>, vector<16x8xf32>, vector<16x16xf32> -> vector<16x16xf32>
    %cst_14 = arith.constant 0xFF800000 : f32
    %33 = vector.broadcast %cst_14 : f32 to vector<16x16xf32>
    %34 = arith.select %6, %32, %33 : vector<16x16xi1>, vector<16x16xf32>
    %cst_15 = arith.constant dense<0xFF800000> : vector<16xf32>
    %35 = vector.multi_reduction <maximumf>, %34, %cst_15 [1] : vector<16x16xf32> to vector<16xf32>
    %36 = vector.shape_cast %35 : vector<16xf32> to vector<16x1xf32>
    %37 = vector.broadcast %36 : vector<16x1xf32> to vector<16x16xf32>
    %38 = arith.subf %34, %37 : vector<16x16xf32>
    %39 = math.exp %38 : vector<16x16xf32>
    %cst_16 = arith.constant dense<0.000000e+00> : vector<16xf32>
    %40 = vector.multi_reduction <add>, %39, %cst_16 [1] : vector<16x16xf32> to vector<16xf32>
    %41 = vector.shape_cast %40 : vector<16xf32> to vector<16x1xf32>
    %42 = tpu.reciprocal %41 {approx = true} : vector<16x1xf32> -> vector<16x1xf32>
    %43 = vector.broadcast %42 : vector<16x1xf32> to vector<16x16xf32>
    %44 = arith.mulf %39, %43 : vector<16x16xf32>
    %cst_17 = arith.constant dense<0.000000e+00> : vector<16x8xf32>
    %45 = tpu.matmul %44, %31, %cst_17 {dimension_numbers = #tpu.dot_dimension_numbers<[1], [0], [0], [1], [0, 0, 1, 1], [], []>} : vector<16x16xf32>, vector<16x8xf32>, vector<16x8xf32> -> vector<16x8xf32>
    %c0_18 = arith.constant 0 : index
    %c8 = arith.constant 8 : index
    %46 = vector.load %arg6[%c0_18, %c8] : memref<16x32xf32, #tpu.memory_space<vmem>>, vector<16x8xf32>
    tpu.vector_store %arg6[%c0_18, %c8], %45 {strides = array<i32>} : memref<16x32xf32, #tpu.memory_space<vmem>>, vector<16x8xf32>,
    %47 = vector.extract_strided_slice %3 {offsets = [0, 16], sizes = [16, 8], strides = [1, 1]} : vector<16x96xf32> to vector<16x8xf32>
    %cst_19 = arith.constant 0.176776692 : f32
    %48 = vector.broadcast %cst_19 : f32 to vector<16x8xf32>
    %49 = arith.mulf %47, %48 : vector<16x8xf32>
    %50 = vector.extract_strided_slice %3 {offsets = [0, 48], sizes = [16, 8], strides = [1, 1]} : vector<16x96xf32> to vector<16x8xf32>
    %51 = vector.extract_strided_slice %3 {offsets = [0, 80], sizes = [16, 8], strides = [1, 1]} : vector<16x96xf32> to vector<16x8xf32>
    %cst_20 = arith.constant dense<0.000000e+00> : vector<16x16xf32>
    %52 = tpu.matmul %49, %50, %cst_20 {dimension_numbers = #tpu.dot_dimension_numbers<[1], [1], [0], [0], [0, 0, 1, 0], [], []>} : vector<16x8xf32>, vector<16x8xf32>, vector<16x16xf32> -> vector<16x16xf32>
    %cst_21 = arith.constant 0xFF800000 : f32
    %53 = vector.broadcast %cst_21 : f32 to vector<16x16xf32>
    %54 = arith.select %6, %52, %53 : vector<16x16xi1>, vector<16x16xf32>
    %cst_22 = arith.constant dense<0xFF800000> : vector<16xf32>
    %55 = vector.multi_reduction <maximumf>, %54, %cst_22 [1] : vector<16x16xf32> to vector<16xf32>
    %56 = vector.shape_cast %55 : vector<16xf32> to vector<16x1xf32>
    %57 = vector.broadcast %56 : vector<16x1xf32> to vector<16x16xf32>
    %58 = arith.subf %54, %57 : vector<16x16xf32>
    %59 = math.exp %58 : vector<16x16xf32>
    %cst_23 = arith.constant dense<0.000000e+00> : vector<16xf32>
    %60 = vector.multi_reduction <add>, %59, %cst_23 [1] : vector<16x16xf32> to vector<16xf32>
    %61 = vector.shape_cast %60 : vector<16xf32> to vector<16x1xf32>
    %62 = tpu.reciprocal %61 {approx = true} : vector<16x1xf32> -> vector<16x1xf32>
    %63 = vector.broadcast %62 : vector<16x1xf32> to vector<16x16xf32>
    %64 = arith.mulf %59, %63 : vector<16x16xf32>
    %cst_24 = arith.constant dense<0.000000e+00> : vector<16x8xf32>
    %65 = tpu.matmul %64, %51, %cst_24 {dimension_numbers = #tpu.dot_dimension_numbers<[1], [0], [0], [1], [0, 0, 1, 1], [], []>} : vector<16x16xf32>, vector<16x8xf32>, vector<16x8xf32> -> vector<16x8xf32>
    %c0_25 = arith.constant 0 : index
    %c16 = arith.constant 16 : index
    %66 = vector.load %arg6[%c0_25, %c16] : memref<16x32xf32, #tpu.memory_space<vmem>>, vector<16x8xf32>
    tpu.vector_store %arg6[%c0_25, %c16], %65 {strides = array<i32>} : memref<16x32xf32, #tpu.memory_space<vmem>>, vector<16x8xf32>,
    %67 = vector.extract_strided_slice %3 {offsets = [0, 24], sizes = [16, 8], strides = [1, 1]} : vector<16x96xf32> to vector<16x8xf32>
    %cst_26 = arith.constant 0.176776692 : f32
    %68 = vector.broadcast %cst_26 : f32 to vector<16x8xf32>
    %69 = arith.mulf %67, %68 : vector<16x8xf32>
    %70 = vector.extract_strided_slice %3 {offsets = [0, 56], sizes = [16, 8], strides = [1, 1]} : vector<16x96xf32> to vector<16x8xf32>
    %71 = vector.extract_strided_slice %3 {offsets = [0, 88], sizes = [16, 8], strides = [1, 1]} : vector<16x96xf32> to vector<16x8xf32>
    %cst_27 = arith.constant dense<0.000000e+00> : vector<16x16xf32>
    %72 = tpu.matmul %69, %70, %cst_27 {dimension_numbers = #tpu.dot_dimension_numbers<[1], [1], [0], [0], [0, 0, 1, 0], [], []>} : vector<16x8xf32>, vector<16x8xf32>, vector<16x16xf32> -> vector<16x16xf32>
    %cst_28 = arith.constant 0xFF800000 : f32
    %73 = vector.broadcast %cst_28 : f32 to vector<16x16xf32>
    %74 = arith.select %6, %72, %73 : vector<16x16xi1>, vector<16x16xf32>
    %cst_29 = arith.constant dense<0xFF800000> : vector<16xf32>
    %75 = vector.multi_reduction <maximumf>, %74, %cst_29 [1] : vector<16x16xf32> to vector<16xf32>
    %76 = vector.shape_cast %75 : vector<16xf32> to vector<16x1xf32>
    %77 = vector.broadcast %76 : vector<16x1xf32> to vector<16x16xf32>
    %78 = arith.subf %74, %77 : vector<16x16xf32>
    %79 = math.exp %78 : vector<16x16xf32>
    %cst_30 = arith.constant dense<0.000000e+00> : vector<16xf32>
    %80 = vector.multi_reduction <add>, %79, %cst_30 [1] : vector<16x16xf32> to vector<16xf32>
    %81 = vector.shape_cast %80 : vector<16xf32> to vector<16x1xf32>
    %82 = tpu.reciprocal %81 {approx = true} : vector<16x1xf32> -> vector<16x1xf32>
    %83 = vector.broadcast %82 : vector<16x1xf32> to vector<16x16xf32>
    %84 = arith.mulf %79, %83 : vector<16x16xf32>
    %cst_31 = arith.constant dense<0.000000e+00> : vector<16x8xf32>
    %85 = tpu.matmul %84, %71, %cst_31 {dimension_numbers = #tpu.dot_dimension_numbers<[1], [0], [0], [1], [0, 0, 1, 1], [], []>} : vector<16x16xf32>, vector<16x8xf32>, vector<16x8xf32> -> vector<16x8xf32>
    %c0_32 = arith.constant 0 : index
    %c24 = arith.constant 24 : index
    %86 = vector.load %arg6[%c0_32, %c24] : memref<16x32xf32, #tpu.memory_space<vmem>>, vector<16x8xf32>
    tpu.vector_store %arg6[%c0_32, %c24], %85 {strides = array<i32>} : memref<16x32xf32, #tpu.memory_space<vmem>>, vector<16x8xf32>,
    %c0_33 = arith.constant 0 : index
    %c0_34 = arith.constant 0 : index
    %87 = vector.load %arg6[%c0_33, %c0_34] : memref<16x32xf32, #tpu.memory_space<vmem>>, vector<16x32xf32>
    %c0_35 = arith.constant 0 : index
    %c0_36 = arith.constant 0 : index
    %88 = vector.load %arg3[%c0_35, %c0_36] : memref<32x32xf32, #tpu.memory_space<vmem>>, vector<32x32xf32>
    %cst_37 = arith.constant dense<0.000000e+00> : vector<16x32xf32>
    %89 = tpu.matmul %87, %88, %cst_37 {dimension_numbers = #tpu.dot_dimension_numbers<[1], [0], [0], [1], [0, 0, 1, 1], [], []>} : vector<16x32xf32>, vector<32x32xf32>, vector<16x32xf32> -> vector<16x32xf32>
    %c0_38 = arith.constant 0 : index
    %c0_39 = arith.constant 0 : index
    %90 = vector.load %arg4[%c0_38, %c0_39] : memref<1x32xf32, #tpu.memory_space<vmem>>, vector<1x32xf32>
    %91 = vector.broadcast %90 : vector<1x32xf32> to vector<16x32xf32>
    %92 = arith.addf %89, %91 : vector<16x32xf32>
    %c0_40 = arith.constant 0 : index
    %c0_41 = arith.constant 0 : index
    %c0_42 = arith.constant 0 : index
    %93 = vector.load %arg5[%c0_40, %c0_41, %c0_42] : memref<1x16x32xf32, #tpu.memory_space<vmem>>, vector<1x16x32xf32>
    %94 = vector.shape_cast %93 : vector<1x16x32xf32> to vector<16x32xf32>
    %95 = vector.shape_cast %92 : vector<16x32xf32> to vector<1x16x32xf32>
    tpu.vector_store %arg5[%c0_40, %c0_41, %c0_42], %95 {strides = array<i32>} : memref<1x16x32xf32, #tpu.memory_space<vmem>>, vector<1x16x32xf32>,
    return
  }
  func.func @transform_0(%arg0: i32) -> (i32, i32, i32) {
    %c0_i32 = arith.constant 0 : i32
    %c0_i32_0 = arith.constant 0 : i32
    %c0_i32_1 = arith.constant 0 : i32
    return %arg0, %c0_i32, %c0_i32_0 : i32, i32, i32
  }
  func.func @transform_1(%arg0: i32) -> (i32, i32) {
    %c0_i32 = arith.constant 0 : i32
    %c0_i32_0 = arith.constant 0 : i32
    %c0_i32_1 = arith.constant 0 : i32
    return %c0_i32, %c0_i32_0 : i32, i32
  }
  func.func @transform_2(%arg0: i32) -> (i32, i32) {
    %c0_i32 = arith.constant 0 : i32
    %c0_i32_0 = arith.constant 0 : i32
    %c0_i32_1 = arith.constant 0 : i32
    return %c0_i32, %c0_i32_0 : i32, i32
  }
  func.func @transform_3(%arg0: i32) -> (i32, i32) {
    %c0_i32 = arith.constant 0 : i32
    %c0_i32_0 = arith.constant 0 : i32
    %c0_i32_1 = arith.constant 0 : i32
    return %c0_i32, %c0_i32_0 : i32, i32
  }
  func.func @transform_4(%arg0: i32) -> (i32, i32, i32) {
    %c0_i32 = arith.constant 0 : i32
    %c0_i32_0 = arith.constant 0 : i32
    %c0_i32_1 = arith.constant 0 : i32
    return %arg0, %c0_i32, %c0_i32_0 : i32, i32, i32
  }
}

</mosaic_0001>

<bundles_post_ra>
// kernel: multi_head_attention.1
= control target key start
LH: loop header
LB: loop body
LE: loop exit
PB: predicated region body
PF: predicated region fallthrough
CT: control target
= control target key end

     0   :  { %9 = vsyncpa [#allocation4], 0  ;;  %s2214_s0 = inlined_call_operand.hbm [shape: f32[2,16,32], index: 0, kind: input, shape index: {}]   ;;  %s2215_s1 = inlined_call_operand.hbm [shape: f32[32,96], index: 1, kind: input, shape index: {}]   ;;  %s2216_s2 = inlined_call_operand.hbm [shape: f32[32,32], index: 2, kind: input, shape index: {}]   ;;  %s2217_s3 = inlined_call_operand.vmem [shape: f32[1,32], index: 3, kind: input, shape index: {}]   ;;  %s2218_s4 = inlined_call_operand.hbm [shape: f32[2,16,32], index: 4, kind: output, shape index: {}]  }
   0x1   :  { %11 = vsyncpa [#allocation4 + $0x1], 0 }
   0x2   :  { %12 = vsyncpa [#allocation7], 0 }
   0x3   :  { %13 = vsyncpa [#allocation5], 0 }
   0x4   :  { %15 = vsyncpa [#allocation5 + $0x1], 0  ;;  %s1872_s15 = smov 0   ;;  %s1874_s16 = smov 0  }
   0x5   :  { %s1876_s17 = smov 0   ;;  %s1878_s18 = smov 0  }
   0x6 LB: > { %s1893_s19 = sadd.s32 4294967295, %s1824_s18   ;;  %s1389_s20 = sadd.s32 4294967294, %s1824_s18   ;;  %s1824_s18 = sphi %s1878_s18, %s2239_s18   ;;  %s1820_s17 = sphi %s1876_s17, %s2238_s17   ;;  %s1816_s16 = sphi %s1874_s16, %s2237_s16   ;;  %s1812_s15 = sphi %s1872_s15, %s2236_s15  }
   0x7   : > { %p41_p0 = scmp.ne.s32.totalorder %s1816_s16, %s1812_s15  ;;  %p2219_p1 = scmp.eq.s32.totalorder %s1893_s19, 0 }
   0x8   : > { %p128_p2 = scmp.eq.s32.totalorder %s1893_s19, 1  ;;  %p134_p3 = scmp.eq.s32.totalorder %s1389_s20, 1 }
   0x9   : > { %p1902_p4 = por %p2219_p1, %p41_p0  ;;  %p1390_p5 = scmp.ge.s32.totalorder %s1824_s18, 1 }
   0xa   : > { %p1907_p6 = por %p134_p3, %p41_p0  ;;  %p141_p7 = scmp.lt.s32.totalorder %s1824_s18, 3 }
   0xb   : > { %s2223_s21 = scalar_select %p1902_p4, 1, 0 }
   0xc   : > { %s2224_s22 = scalar_select %p1907_p6, 1, 0 }
   0xd   : > { %p1912_p8 = pnand %p1390_p5, %p141_p7  ;;  %s1826_s24 = smov [#allocation6]  }
   0xe   : > { %s153_s25 = sshll.u32 %s1826_s24, 4  ;;  %s1827_s27 = smov [#allocation8]   ;;  %s154_s25 = int_to_ptr.vmem [resolvable:$true] %s153_s25 }
   0xf   : > { %s2225_s23 = scalar_select %p1912_p8, 1, 0 }
  0x10   : > { %p1572_p9 = pneg %p1912_p8  ;;  %s166_s28 = sshll.u32 %s1827_s27, 4  ;;  %s167_s28 = int_to_ptr.vmem [resolvable:$true] %s166_s28 }
  0x11   : > { %s1687_s29 = scalar_lea.vmem %s154_s25, 512  ;;  %p1695_p5 = scmp.lt.s32.totalorder %s154_s25, %s154_s25 }
  0x12   : > { %p1921_p11 = pnand %p1572_p9, %p2219_p1  ;;  %p1688_p13 = scmp.ne.s32.totalorder %s154_s25, %s1687_s29 }
  0x13   : > { %p1696_p7 = scmp.lt.s32.totalorder %s1687_s29, %s1687_s29 }
  0x14   : > { %p1678_p12 = pneg %p1921_p11 }
  0x15   : > { %p1697_p10 = por %p1696_p7, %p1695_p5 }
  0x16   : > { %p1690_p0 = pnand %p1688_p13, %p1678_p12 }
  0x18   : > { %p1691_p3 = pneg %p1690_p0 }
  0x1a   : > { %p1698_p9 = pnand %p1697_p10, %p1691_p3 }
  0x1c   : > { %1701 = shalt.err (!%p1698_p9)
}
  0x1d   : > { %s1828_s30 = smov 128   ;;  %s1829_s5 = smov 8  }
  0x1e   : > { %1575 = dma.hbm_to_vmem [thread:$0]  (!%p1921_p11), %s2215_s1, 512, %s154_s25, [#allocation7], %s1828_s30, %s1828_s30, %s1829_s5  }
  0x1f   : > { %s1713_s8 = scalar_lea.vmem %s167_s28, 512  ;;  %p1721_p10 = scmp.lt.s32.totalorder %s167_s28, %s167_s28 }
  0x20   : > { %p1714_p13 = scmp.ne.s32.totalorder %s167_s28, %s1713_s8  ;;  %p1722_p3 = scmp.lt.s32.totalorder %s1713_s8, %s1713_s8 }
  0x22   : > { %p1716_p0 = pnand %p1714_p13, %p1678_p12  ;;  %p1723_p7 = por %p1722_p3, %p1721_p10 }
  0x24   : > { %p1717_p5 = pneg %p1716_p0 }
  0x26   : > { %p1724_p9 = pnand %p1723_p7, %p1717_p5 }
  0x28   : > { %1727 = shalt.err (!%p1724_p9)
}
  0x29   : > { %1578 = dma.hbm_to_vmem [thread:$0]  (!%p1921_p11), %s2216_s2, 512, %s167_s28, [#allocation7], %s1828_s30, %s1828_s30, %s1829_s5  }
  0x2a   : > { %s1950_s11 = sadd.s32 1, %s1824_s18   ;;  %s28_s12 = sadd.s32 1, %s1820_s17 }
  0x2b   : > { %s25_s13 = ssub.s32 %s1824_s18, %s1950_s11  ;;  %p35_p12 = scmp.ne.s32.totalorder %s1820_s17, %s1816_s16 }
  0x2c   : > { %p26_p13 = scmp.eq.s32.totalorder %s25_s13, 0  ;;  %p36_p0 = scmp.eq.s32.totalorder %s1824_s18, 0 }
  0x2d   : > { %p1960_p5 = por %p128_p2, %p35_p12  ;;  %p1589_p10 = scmp.lt.s32.totalorder %s1824_s18, 2 }
  0x2e   : > { %s1966_s20 = scalar_select %p26_p13, %s1820_s17, %s28_s12  }
  0x2f   : > { %s2227_s14 = scalar_select %p1960_p5, 1, 0 }
  0x30   : > { %p37_p3 = por %p36_p0, %p35_p12  ;;  %s183_s24 = sand.u32 1, %s1820_s17  }
  0x31   : > { %s1394_s25 = sshll.u32 %s183_s24, 4  ;;  %s1436_s26 = sshll.u32 %s1824_s18, 8 }
  0x32   : > { %s1973_s29 = scalar_lea.hbm %s2214_s0, %s1436_s26  ;;  %s187_s6 = scalar_lea.vmem [#allocation3], %s1394_s25 }
  0x33   : > { %s194_s7 = sshll.u32 %s187_s6, 4  ;;  %p1977_p2 = pnand %p1589_p10, %p37_p3  ;;  %s1975_s7 = int_to_ptr.vmem [resolvable:$true] %s194_s7 }
  0x34   : > { %s1981_s9 = scalar_lea.sflag [#allocation4], %s183_s24  ;;  %s1728_s10 = scalar_lea.hbm %s1973_s29, 256 }
  0x35   : > { %p1729_p11 = scmp.ne.s32.totalorder %s1973_s29, %s1728_s10  ;;  %p1730_p7 = pneg %p1977_p2 }
  0x36   : > { %s1733_s25 = scalar_lea.hbm %s2214_s0, 512  ;;  %p1734_p13 = scmp.lt.s32.totalorder %s1973_s29, %s2214_s0 }
  0x37   : > { %p1731_p9 = pnand %p1730_p7, %p1729_p11  ;;  %p1735_p0 = scmp.lt.s32.totalorder %s1733_s25, %s1728_s10 }
  0x39   : > { %p1732_p12 = pneg %p1731_p9  ;;  %p1736_p10 = por %p1735_p0, %p1734_p13 }
  0x3b   : > { %p1737_p3 = pnand %p1736_p10, %p1732_p12 }
  0x3d   : > { %1740 = shalt.err (!%p1737_p3)
}
  0x3e   : > { %s1741_s24 = scalar_lea.vmem %s1975_s7, 256  ;;  %s1830_s28 = smov [#allocation3]  }
  0x3f   : > { %p1742_p1 = scmp.ne.s32.totalorder %s1975_s7, %s1741_s24  ;;  %s1746_s6 = sshll.u32 %s1830_s28, 4  ;;  %s1747_s6 = int_to_ptr.vmem [resolvable:$false] %s1746_s6 }
  0x40   : > { %s1748_s12 = scalar_lea.vmem %s1747_s6, 512  ;;  %p1749_p9 = scmp.lt.s32.totalorder %s1975_s7, %s1747_s6 }
  0x41   : > { %p1744_p6 = pnand %p1742_p1, %p1730_p7  ;;  %p1750_p5 = scmp.lt.s32.totalorder %s1748_s12, %s1741_s24 }
  0x43   : > { %p1745_p11 = pneg %p1744_p6  ;;  %p1751_p4 = por %p1750_p5, %p1749_p9 }
  0x45   : > { %p1752_p8 = pnand %p1751_p4, %p1745_p11 }
  0x47   : > { %1755 = shalt.err (!%p1752_p8)
}
  0x48   : > { %1582 = dma.hbm_to_vmem [thread:$0]  (!%p1977_p2), %s1973_s29, 256, %s1975_s7, %s1981_s9, %s1828_s30, %s1828_s30, %s1829_s5  }
  0x49   : > { %p2229_p1 = scmp.ne.s32.totalorder %s2225_s23, 0 }
  0x4a   : > { %s2008_s10 = sand.u32 (!%p2229_p1), 1, %s1816_s16   ;;  %p2230_p4 = scmp.ne.s32.totalorder (!%p2229_p1), %s2223_s21, 0 }
  0x4b   : > { %206 = sbr.rel (%p2229_p1) target bundleno = 3008 (0xbc0), region = 36  ;;  %s1398_s13 = sshll.u32 (!%p2229_p1), %s2008_s10, 4 }
  0x4c   : > { %s209_s25 = scalar_lea.sflag (!%p2229_p1), [#allocation4], %s2008_s10  ;;  %s212_s8 = scalar_lea.vmem (!%p2229_p1), [#allocation3], %s1398_s13 }
  0x50   : > { %1799 = dma.done.wait (%p2230_p4), %s209_s25, 256  }
  0x51   : > { %1801 = vsyncadd (%p2230_p4), %s209_s25, 4294967040  ;;  %p2231_p6 = scmp.eq.s32.totalorder %s1893_s19, 0 }
  0x53   : > { %1803 = dma.done.wait (%p2231_p6), [#allocation7], 1024   ;;  %p2232_p8 = pmov %p2231_p6 }
  0x54   : > { %vm251_vm0 = vcmask 261120   ;;  %v250_v0 = vld [vmem:[#allocation6 + $0x18] sm:$0xff]  ;;  %v249_v1 = vld [vmem:[#allocation6 + $0x10] sm:$0xff]  ;;  %v248_v3 = vld [vmem:[#allocation6 + $0x8] sm:$0xff]  ;;  %s1831_s21 = smov 96   ;;  %vm348_vm1 = vcmask 64512   ;;  %v333_v12 = vlaneseq }
  0x55   : > { %1805 = vsyncadd (%p2232_p8), [#allocation7], 4294966272  ;;  %1482 = vmatprep.subr.mxu0 %v250_v0  ;;  %v245_v2 = vld [vmem:[%s212_s8] sm:$0xff]  ;;  %v246_v5 = vld [vmem:[%s212_s8 + $0x8] sm:$0xff]  ;;  %vm436_vm4 = vcmask 130048   ;;  %s1832_s23 = smov 64  }
  0x56   : > { %1483 = vmatpush3.msra.mxu0 %v250_v0  ;;  %1490 = vmatprep.mubr.msk.f32.mxu0 %vm251_vm0, %v245_v2  ;;  %v247_v4 = vld [vmem:[#allocation6] sm:$0xff]  ;;  %v2044_v13 = vshrl.u32 %v333_v12, 7  ;;  %v2049_v15 = vand.u32 127, %v333_v12  ;;  %s1833_s30 = smov 120   ;;  %s1834_s5 = smov 88   ;;  %vm758_vm5 = vcmask 130112  }
  0x57   : > { %1484 = vmatprep.subr.mxu0 %v249_v1  ;;  %s1835_s29 = smov 56   ;;  %s1836_s7 = smov 80   ;;  %vm971_vm6 = vcmask 195712   ;;  %vm1184_vm7 = vcmask 261312  }
  0x58   : > { %1485 = vmatpush3.msra.mxu0 %v249_v1  ;;  %v2047_v14 = vadd.s32 8, %v2044_v13  ;;  %vm338_vm2 = vcmp.ge.s32.totalorder %v2044_v13, %v2049_v15  ;;  %s1837_s9 = smov 112   ;;  %s1838_s26 = smov 48  }
  0x59   : > { %1486 = vmatprep.subr.mxu0 %v248_v3  ;;  %s1839_s27 = smov 72   ;;  %s1840_s24 = smov 104  }
  0x5a   : > { %1487 = vmatpush3.msra.mxu0 %v248_v3  ;;  %vm339_vm3 = vcmp.ge.s32.totalorder %v2047_v14, %v2049_v15  ;;  %s1841_s28 = smov 40   ;;  %s1842_s6 = smov 8  }
  0x5b   : > { %1488 = vmatprep.subr.mxu0 %v247_v4  ;;  %s1843_s12 = smov 16   ;;  %s1844_s25 = smov 24  }
  0x5c   : > { %1489 = vmatpush3.msra.mxu0 %v247_v4  ;;  %p2233_p2 = scmp.ne.s32.totalorder %s2227_s14, 0 }
  0x5d   : > { %1491 = vmatmul.mubr.msk.f32.vlgmr.msra.gmra.mxu0 %vm251_vm0, %v246_v5 }
 0x11d   : > { %v2024_v6 = vpop.f32.mrf.mxu0 }
 0x11e   : > { %346 = vrot.lane.b32.xlu0 %v2024_v6, %s1831_s21  ;;  %v2040_v11 = vmul.f32 0.17677669, %v2024_v6 }
 0x11f   : > { %v2027_v7 = vpop.f32.mrf.mxu0 }
 0x120   : > { %v2030_v8 = vmul.f32 0.17677669, %v2027_v7 }
 0x122   : > { %344 = vrot.lane.b32.xlu0 %v2027_v7, %s1831_s21  ;;  %1497 = vmatprep.mubr.msk.f32.mxu1 %vm348_vm1, %v2030_v8 }
 0x190   : > { %v347_v9 = vpop.permute.xlu0 %346 }
 0x191   : > { %1493 = vmatprep.subr.msk.mxu1 %vm348_vm1, %v347_v9 }
 0x192   : > { %1494 = vmatpush3.xpose.msk.msra.mxu1 %vm348_vm1, %v347_v9 }
 0x194   : > { %v345_v10 = vpop.permute.xlu0 %344 }
 0x195   : > { %1495 = vmatprep.subr.msk.mxu1 %vm348_vm1, %v345_v10 }
 0x196   : > { %1496 = vmatpush3.xpose.msk.msra.mxu1 %vm348_vm1, %v345_v10 }
 0x199   : > { %1498 = vmatmul.mubr.msk.f32.vlgmr.msra.gmra.mxu1 %vm348_vm1, %v2040_v11 }
 0x259   : > { %v1499_v16 = vpop.f32.mrf.mxu1 }
 0x25a   : > { %v435_v20 = vsel %vm339_vm3, %v1499_v16, -inf }
 0x25b   : > { %v425_v17 = vpop.f32.mrf.mxu1  ;;  %v440_v21 = vsel %vm436_vm4, %v435_v20, -inf }
 0x25c   : > { %v434_v18 = vsel %vm338_vm2, %v425_v17, -inf }
 0x25d   : > { %v437_v19 = vsel %vm436_vm4, %v434_v18, -inf }
 0x25e   : > { %438 = vmax.xlane.f32.xlu1 %v437_v19 }
 0x262   : > { %441 = vmax.xlane.f32.xlu1 %v440_v21 }
 0x2e7   : > { %v439_v22 = vpop.xlane.xlu1 %438 }
 0x2e8   : > { %v443_v23 = vsub.f32 %v434_v18, %v439_v22 }
 0x2ea   : > { %v445_v24 = vmul.f32 1.442695, %v443_v23 }
 0x2eb   : > { %v442_v25 = vpop.xlane.xlu1 %441 }
 0x2ec   : > { %1644 = vpow2.f32 %v445_v24  ;;  %v444_v26 = vsub.f32 %v435_v20, %v442_v25 }
 0x2ee   : > { %v447_v27 = vmul.f32 1.442695, %v444_v26 }
 0x2f0   : > { %1646 = vpow2.f32 %v447_v27 }
 0x2f9   : > { %v1645_v28 = vpop.eup %1644 }
 0x2fa   : > { %v449_v29 = vsel %vm436_vm4, %v1645_v28, 0.0 }
 0x2fb   : > { %450 = vadd.xlane.f32.xlu0 %v449_v29 }
 0x2fd   : > { %v1647_v30 = vpop.eup %1646 }
 0x2fe   : > { %v452_v31 = vsel %vm436_vm4, %v1647_v30, 0.0 }
 0x2ff   : > { %453 = vadd.xlane.f32.xlu1 %v452_v31 }
 0x310   : > { %461 = vrot.lane.b32.xlu1 %v2024_v6, %s1832_s23 }
 0x311   : > { %548 = vrot.lane.b32.xlu0 %v2030_v8, %s1833_s30 }
 0x314   : > { %459 = vrot.lane.b32.xlu1 %v2027_v7, %s1832_s23  ;;  %s244_s23 = scalar_lea.vmem [#allocation9], %s1398_s13  ;;  %s1284_s13 = scalar_lea.sflag [#allocation5], %s2008_s10 }
 0x318   : > { %554 = vrot.lane.b32.xlu1 %v2024_v6, %s1834_s5 }
 0x31c   : > { %552 = vrot.lane.b32.xlu1 %v2027_v7, %s1834_s5  ;;  %s1437_s5 = sshll.u32 %s1893_s19, 8  ;;  %s1845_s19 = smov [#allocation9]  }
 0x320   : > { %550 = vrot.lane.b32.xlu1 %v2040_v11, %s1833_s30  ;;  %s1297_s30 = sshll.u32 %s244_s23, 4  ;;  %s2163_s30 = int_to_ptr.vmem [resolvable:$true] %s1297_s30 }
 0x384   : > { %v451_v32 = vpop.xlane.xlu0 %450 }
 0x385   : > { %1648 = vrcp.f32 %v451_v32 }
 0x388   : > { %v454_v33 = vpop.xlane.xlu1 %453  ;;  %v549_v42 = vpop.permute.xlu0 %548 }
 0x389   : > { %1650 = vrcp.f32 %v454_v33 }
 0x38c   : > { %v462_v34 = vpop.permute.xlu1 %461 }
 0x38d   : > { %1500 = vmatprep.subr.mxu1 %v462_v34 }
 0x38e   : > { %1501 = vmatpush3.msra.mxu1 %v462_v34 }
 0x390   : > { %v460_v35 = vpop.permute.xlu1 %459 }
 0x391   : > { %1502 = vmatprep.subr.mxu1 %v460_v35 }
 0x392   : > { %v1649_v36 = vpop.eup %1648  ;;  %1503 = vmatpush3.msra.mxu1 %v460_v35 }
 0x393   : > { %v457_v37 = vmul.f32 %v1649_v36, %v1645_v28 }
 0x394   : > { %v555_v38 = vpop.permute.xlu1 %554 }
 0x395   : > { %1504 = vmatprep.mubr.msk.f32.mxu1 %vm436_vm4, %v457_v37  ;;  %1507 = vmatprep.subr.msk.mxu1 %vm348_vm1, %v555_v38 }
 0x396   : > { %v1651_v39 = vpop.eup %1650 }
 0x397   : > { %v458_v40 = vmul.f32 %v1651_v39, %v1647_v30 }
 0x398   : > { %v553_v41 = vpop.permute.xlu1 %552 }
 0x399   : > { %1505 = vmatmul.mubr.msk.f32.vlgmr.msra.gmra.mxu1 %vm436_vm4, %v458_v40 }
 0x39a   : > { %1508 = vmatpush3.xpose.msk.msra.mxu1 %vm348_vm1, %v555_v38  ;;  %1511 = vmatprep.mubr.msk.f32.mxu1 %vm348_vm1, %v549_v42 }
 0x39b   : > { %1509 = vmatprep.subr.msk.mxu1 %vm348_vm1, %v553_v41 }
 0x39c   : > { %v551_v43 = vpop.permute.xlu1 %550 }
 0x39e   : > { %1510 = vmatpush3.xpose.msk.msra.mxu1 %vm348_vm1, %v553_v41 }
 0x3a1   : > { %1512 = vmatmul.mubr.msk.f32.vlgmr.msra.gmra.mxu1 %vm348_vm1, %v551_v43 }
 0x459   : > { %v1506_v44 = vpop.f32.mrf.mxu1 }
 0x45a   : > { %547 = vst.msk [vmem:[#allocation2 + $0x8] sm:$0xff] %vm348_vm1, %v1506_v44 }
 0x45b   : > { %v537_v45 = vpop.f32.mrf.mxu1 }
 0x45c   : > { %546 = vst.msk [vmem:[#allocation2] sm:$0xff] %vm348_vm1, %v537_v45 }
 0x461   : > { %v1513_v46 = vpop.f32.mrf.mxu1 }
 0x462   : > { %v640_v47 = vsel %vm339_vm3, %v1513_v46, -inf }
 0x463   : > { %v630_v48 = vpop.f32.mrf.mxu1  ;;  %v644_v49 = vsel %vm436_vm4, %v640_v47, -inf }
 0x464   : > { %v639_v50 = vsel %vm338_vm2, %v630_v48, -inf  ;;  %645 = vmax.xlane.f32.xlu0 %v644_v49 }
 0x465   : > { %v641_v51 = vsel %vm436_vm4, %v639_v50, -inf }
 0x466   : > { %642 = vmax.xlane.f32.xlu1 %v641_v51 }
 0x477   : > { %665 = vrot.lane.b32.xlu1 %v2024_v6, %s1835_s29 }
 0x47a   : > { %663 = vrot.lane.b32.xlu0 %v2027_v7, %s1835_s29 }
 0x47b   : > { %767 = vrot.lane.b32.xlu1 %v2024_v6, %s1836_s7 }
 0x47e   : > { %761 = vrot.lane.b32.xlu0 %v2030_v8, %s1837_s9 }
 0x47f   : > { %765 = vrot.lane.b32.xlu1 %v2027_v7, %s1836_s7 }
 0x4ed   : > { %v646_v52 = vpop.xlane.xlu0 %645 }
 0x4ee   : > { %v648_v53 = vsub.f32 %v640_v47, %v646_v52 }
 0x4ef   : > { %v643_v54 = vpop.xlane.xlu1 %642 }
 0x4f0   : > { %v651_v55 = vmul.f32 1.442695, %v648_v53  ;;  %v647_v56 = vsub.f32 %v639_v50, %v643_v54 }
 0x4f1   : > { %v664_v59 = vpop.permute.xlu0 %663 }
 0x4f2   : > { %1652 = vpow2.f32 %v651_v55  ;;  %v649_v57 = vmul.f32 1.442695, %v647_v56 }
 0x4f3   : > { %v666_v58 = vpop.permute.xlu1 %665 }
 0x4f4   : > { %1654 = vpow2.f32 %v649_v57  ;;  %1514 = vmatprep.subr.mxu0 %v666_v58 }
 0x4f5   : > { %1515 = vmatpush3.msra.mxu0 %v666_v58  ;;  %v762_v12 = vpop.permute.xlu0 %761 }
 0x4f6   : > { %1516 = vmatprep.subr.mxu0 %v664_v59 }
 0x4f7   : > { %1517 = vmatpush3.msra.mxu0 %v664_v59  ;;  %v768_v60 = vpop.permute.xlu1 %767 }
 0x4f8   : > { %1521 = vmatprep.subr.msk.mxu0 %vm348_vm1, %v768_v60 }
 0x4fb   : > { %v766_v1 = vpop.permute.xlu1 %765 }
 0x4ff   : > { %v1653_v61 = vpop.eup %1652 }
 0x500   : > { %v656_v62 = vsel %vm436_vm4, %v1653_v61, 0.0 }
 0x501   : > { %v1655_v63 = vpop.eup %1654  ;;  %657 = vadd.xlane.f32.xlu1 %v656_v62 }
 0x502   : > { %v653_v0 = vsel %vm436_vm4, %v1655_v63, 0.0 }
 0x505   : > { %654 = vadd.xlane.f32.xlu1 %v653_v0 }
 0x516   : > { %763 = vrot.lane.b32.xlu1 %v2040_v11, %s1837_s9  ;;  %s2169_s9 = scalar_lea.hbm %s2218_s4, %s1437_s5 }
 0x58a   : > { %v658_v2 = vpop.xlane.xlu1 %657 }
 0x58b   : > { %1656 = vrcp.f32 %v658_v2 }
 0x58e   : > { %v655_v3 = vpop.xlane.xlu1 %654 }
 0x58f   : > { %1658 = vrcp.f32 %v655_v3 }
 0x592   : > { %v764_v16 = vpop.permute.xlu1 %763 }
 0x598   : > { %v1657_v4 = vpop.eup %1656 }
 0x599   : > { %v662_v10 = vmul.f32 %v1657_v4, %v1653_v61 }
 0x59c   : > { %v1659_v5 = vpop.eup %1658 }
 0x59d   : > { %v661_v9 = vmul.f32 %v1659_v5, %v1655_v63 }
 0x59f   : > { %1518 = vmatprep.mubr.msk.f32.mxu0 %vm436_vm4, %v661_v9 }
 0x5a0   : > { %1519 = vmatmul.mubr.msk.f32.vlgmr.msra.gmra.mxu0 %vm436_vm4, %v662_v10  ;;  %v1191_v10 = vld [vmem:[#allocation8 + $0x10] sm:$0xff] }
 0x5a1   : > { %1522 = vmatpush3.xpose.msk.msra.mxu0 %vm348_vm1, %v768_v60  ;;  %1525 = vmatprep.mubr.msk.f32.mxu0 %vm348_vm1, %v762_v12  ;;  %v1190_v12 = vld [vmem:[#allocation8 + $0x8] sm:$0xff] }
 0x5a2   : > { %1523 = vmatprep.subr.msk.mxu0 %vm348_vm1, %v766_v1 }
 0x5a5   : > { %1524 = vmatpush3.xpose.msk.msra.mxu0 %vm348_vm1, %v766_v1 }
 0x5a8   : > { %1526 = vmatmul.mubr.msk.f32.vlgmr.msra.gmra.mxu0 %vm348_vm1, %v764_v16  ;;  %v1189_v16 = vld [vmem:[#allocation8] sm:$0xff] }
 0x660   : > { %v2105_v17 = vpop.f32.mrf.mxu0 }
 0x662   : > { %v2107_v18 = vpop.f32.mrf.mxu0 }
 0x668   : > { %v1527_v19 = vpop.f32.mrf.mxu0 }
 0x669   : > { %v853_v20 = vsel %vm339_vm3, %v1527_v19, -inf }
 0x66a   : > { %v843_v21 = vpop.f32.mrf.mxu0  ;;  %v857_v22 = vsel %vm436_vm4, %v853_v20, -inf }
 0x66b   : > { %v852_v23 = vsel %vm338_vm2, %v843_v21, -inf  ;;  %858 = vmax.xlane.f32.xlu1 %v857_v22 }
 0x66c   : > { %v854_v24 = vsel %vm436_vm4, %v852_v23, -inf }
 0x66d   : > { %855 = vmax.xlane.f32.xlu0 %v854_v24 }
 0x67c   : > { %878 = vrot.lane.b32.xlu1 %v2024_v6, %s1838_s26 }
 0x680   : > { %980 = vrot.lane.b32.xlu1 %v2024_v6, %s1839_s27 }
 0x684   : > { %978 = vrot.lane.b32.xlu1 %v2027_v7, %s1839_s27  ;;  %s1760_s27 = sshll.u32 %s1845_s19, 4  ;;  %s1761_s27 = int_to_ptr.vmem [resolvable:$false] %s1760_s27 }
 0x685   : > { %p1763_p13 = scmp.lt.s32.totalorder %s2163_s30, %s1761_s27 }
 0x688   : > { %976 = vrot.lane.b32.xlu1 %v2040_v11, %s1840_s24 }
 0x6f4   : > { %v859_v25 = vpop.xlane.xlu1 %858 }
 0x6f5   : > { %v861_v26 = vsub.f32 %v853_v20, %v859_v25 }
 0x6f6   : > { %v856_v27 = vpop.xlane.xlu0 %855 }
 0x6f7   : > { %v864_v28 = vmul.f32 1.442695, %v861_v26  ;;  %v860_v29 = vsub.f32 %v852_v23, %v856_v27  ;;  %v1428_v23 = vld [vmem:[%s2217_s3] ss:$0 sm:$0xff] }
 0x6f8   : > { %v879_v30 = vpop.permute.xlu1 %878 }
 0x6f9   : > { %1660 = vpow2.f32 %v864_v28  ;;  %v862_v31 = vmul.f32 1.442695, %v860_v29  ;;  %1528 = vmatprep.subr.mxu1 %v879_v30 }
 0x6fa   : > { %1529 = vmatpush3.msra.mxu1 %v879_v30 }
 0x6fb   : > { %1662 = vpow2.f32 %v862_v31 }
 0x6fc   : > { %v981_v38 = vpop.permute.xlu1 %980 }
 0x706   : > { %v1661_v32 = vpop.eup %1660 }
 0x707   : > { %v869_v33 = vsel %vm436_vm4, %v1661_v32, 0.0 }
 0x708   : > { %v1663_v34 = vpop.eup %1662  ;;  %870 = vadd.xlane.f32.xlu0 %v869_v33 }
 0x709   : > { %v866_v35 = vsel %vm436_vm4, %v1663_v34, 0.0 }
 0x70c   : > { %867 = vadd.xlane.f32.xlu0 %v866_v35 }
 0x722   : > { %876 = vrot.lane.b32.xlu0 %v2027_v7, %s1838_s26  ;;  %s1756_s26 = scalar_lea.vmem %s2163_s30, 256 }
 0x723   : > { %p1757_p5 = scmp.ne.s32.totalorder %s2163_s30, %s1756_s26 }
 0x725   : > { %p1758_p7 = pnand %p1757_p5, %p2233_p2 }
 0x726   : > { %974 = vrot.lane.b32.xlu0 %v2030_v8, %s1840_s24  ;;  %v979_v8 = vpop.permute.xlu1 %978  ;;  %s1762_s24 = scalar_lea.vmem %s1761_s27, 512 }
 0x727   : > { %p1759_p12 = pneg %p1758_p7  ;;  %p1764_p0 = scmp.lt.s32.totalorder %s1762_s24, %s1756_s26 }
 0x729   : > { %p1765_p10 = por %p1764_p0, %p1763_p13 }
 0x72a   : > { %v977_v44 = vpop.permute.xlu1 %976 }
 0x72b   : > { %p1766_p3 = pnand %p1765_p10, %p1759_p12 }
 0x791   : > { %v871_v11 = vpop.xlane.xlu0 %870 }
 0x792   : > { %1664 = vrcp.f32 %v871_v11 }
 0x795   : > { %v868_v36 = vpop.xlane.xlu0 %867 }
 0x796   : > { %1666 = vrcp.f32 %v868_v36 }
 0x799   : > { %v877_v37 = vpop.permute.xlu0 %876 }
 0x79a   : > { %1530 = vmatprep.subr.mxu1 %v877_v37 }
 0x79b   : > { %1531 = vmatpush3.msra.mxu1 %v877_v37 }
 0x79c   : > { %1535 = vmatprep.subr.msk.mxu1 %vm348_vm1, %v981_v38 }
 0x79d   : > { %v975_v43 = vpop.permute.xlu0 %974 }
 0x79f   : > { %v1665_v39 = vpop.eup %1664 }
 0x7a0   : > { %v875_v42 = vmul.f32 %v1665_v39, %v1661_v32 }
 0x7a3   : > { %v1667_v40 = vpop.eup %1666 }
 0x7a4   : > { %v874_v41 = vmul.f32 %v1667_v40, %v1663_v34 }
 0x7a6   : > { %1532 = vmatprep.mubr.msk.f32.mxu1 %vm436_vm4, %v874_v41 }
 0x7a7   : > { %1533 = vmatmul.mubr.msk.f32.vlgmr.msra.gmra.mxu1 %vm436_vm4, %v875_v42 }
 0x7a8   : > { %1536 = vmatpush3.xpose.msk.msra.mxu1 %vm348_vm1, %v981_v38  ;;  %1539 = vmatprep.mubr.msk.f32.mxu1 %vm348_vm1, %v975_v43 }
 0x7a9   : > { %1537 = vmatprep.subr.msk.mxu1 %vm348_vm1, %v979_v8 }
 0x7ac   : > { %1538 = vmatpush3.xpose.msk.msra.mxu1 %vm348_vm1, %v979_v8 }
 0x7af   : > { %1540 = vmatmul.mubr.msk.f32.vlgmr.msra.gmra.mxu1 %vm348_vm1, %v977_v44 }
 0x867   : > { %v1534_v45 = vpop.f32.mrf.mxu1 }
 0x869   : > { %v954_v46 = vpop.f32.mrf.mxu1 }
 0x86f   : > { %v1541_v47 = vpop.f32.mrf.mxu1 }
 0x870   : > { %v1066_v48 = vsel %vm339_vm3, %v1541_v47, -inf }
 0x871   : > { %v1056_v49 = vpop.f32.mrf.mxu1  ;;  %v1070_v50 = vsel %vm436_vm4, %v1066_v48, -inf }
 0x872   : > { %v1065_v51 = vsel %vm338_vm2, %v1056_v49, -inf  ;;  %1071 = vmax.xlane.f32.xlu1 %v1070_v50 }
 0x873   : > { %v1067_v52 = vsel %vm436_vm4, %v1065_v51, -inf }
 0x874   : > { %1068 = vmax.xlane.f32.xlu0 %v1067_v52 }
 0x883   : > { %1091 = vrot.lane.b32.xlu1 %v2024_v6, %s1841_s28 }
 0x887   : > { %752 = vrot.lane.b32.xlu1 %v2107_v18, %s1842_s6 }
 0x88b   : > { %754 = vrot.lane.b32.xlu1 %v2105_v17, %s1842_s6 }
 0x88f   : > { %967 = vrot.lane.b32.xlu1 %v1534_v45, %s1843_s12 }
 0x8fb   : > { %v1072_v14 = vpop.xlane.xlu1 %1071 }
 0x8fc   : > { %v1074_v13 = vsub.f32 %v1066_v48, %v1072_v14 }
 0x8fd   : > { %v1069_v15 = vpop.xlane.xlu0 %1068 }
 0x8fe   : > { %v1077_v53 = vmul.f32 1.442695, %v1074_v13  ;;  %v1073_v54 = vsub.f32 %v1065_v51, %v1069_v15 }
 0x8ff   : > { %v1092_v55 = vpop.permute.xlu1 %1091 }
 0x900   : > { %1668 = vpow2.f32 %v1077_v53  ;;  %v1075_v56 = vmul.f32 1.442695, %v1073_v54  ;;  %1542 = vmatprep.subr.mxu0 %v1092_v55 }
 0x901   : > { %1543 = vmatpush3.msra.mxu0 %v1092_v55 }
 0x902   : > { %1670 = vpow2.f32 %v1075_v56 }
 0x903   : > { %v753_v6 = vpop.permute.xlu1 %752 }
 0x904   : > { %759 = vst.msk [vmem:[#allocation2] sm:$0xff] %vm758_vm5, %v753_v6 }
 0x907   : > { %v755_v57 = vpop.permute.xlu1 %754 }
 0x908   : > { %760 = vst.msk [vmem:[#allocation2 + $0x8] sm:$0xff] %vm758_vm5, %v755_v57 }
 0x90b   : > { %v968_v58 = vpop.permute.xlu1 %967 }
 0x90c   : > { %973 = vst.msk [vmem:[#allocation2 + $0x8] sm:$0xff] %vm971_vm6, %v968_v58 }
 0x90d   : > { %v1669_v59 = vpop.eup %1668 }
 0x90e   : > { %v1082_v60 = vsel %vm436_vm4, %v1669_v59, 0.0 }
 0x90f   : > { %v1671_v61 = vpop.eup %1670  ;;  %1083 = vadd.xlane.f32.xlu0 %v1082_v60 }
 0x910   : > { %v1079_v62 = vsel %vm436_vm4, %v1671_v61, 0.0 }
 0x913   : > { %1080 = vadd.xlane.f32.xlu0 %v1079_v62 }
 0x929   : > { %1089 = vrot.lane.b32.xlu0 %v2027_v7, %s1841_s28  ;;  %v1192_v7 = vld [vmem:[#allocation8 + $0x18] sm:$0xff] }
 0x92d   : > { %965 = vrot.lane.b32.xlu0 %v954_v46, %s1843_s12 }
 0x998   : > { %v1084_v63 = vpop.xlane.xlu0 %1083 }
 0x999   : > { %1672 = vrcp.f32 %v1084_v63 }
 0x99c   : > { %v1081_v0 = vpop.xlane.xlu0 %1080 }
 0x99d   : > { %1674 = vrcp.f32 %v1081_v0 }
 0x9a0   : > { %v1090_v1 = vpop.permute.xlu0 %1089 }
 0x9a1   : > { %1544 = vmatprep.subr.mxu0 %v1090_v1 }
 0x9a2   : > { %1545 = vmatpush3.msra.mxu0 %v1090_v1 }
 0x9a3   : > { %1549 = vmatprep.subr.mxu0 %v1192_v7 }
 0x9a4   : > { %v966_v2 = vpop.permute.xlu0 %965 }
 0x9a5   : > { %972 = vst.msk [vmem:[#allocation2] sm:$0xff] %vm971_vm6, %v966_v2 }
 0x9a6   : > { %v1673_v3 = vpop.eup %1672 }
 0x9a7   : > { %v1088_v9 = vmul.f32 %v1673_v3, %v1669_v59 }
 0x9aa   : > { %v1675_v4 = vpop.eup %1674 }
 0x9ab   : > { %v1087_v5 = vmul.f32 %v1675_v4, %v1671_v61 }
 0x9ad   : > { %1546 = vmatprep.mubr.msk.f32.mxu0 %vm436_vm4, %v1087_v5 }
 0x9ae   : > { %1547 = vmatmul.mubr.msk.f32.vlgmr.msra.gmra.mxu0 %vm436_vm4, %v1088_v9 }
 0x9af   : > { %1550 = vmatpush3.msra.mxu0 %v1192_v7 }
 0x9b0   : > { %1551 = vmatprep.subr.mxu0 %v1191_v10 }
 0x9b1   : > { %1552 = vmatpush3.msra.mxu0 %v1191_v10 }
 0x9b2   : > { %1553 = vmatprep.subr.mxu0 %v1190_v12 }
 0x9b3   : > { %1554 = vmatpush3.msra.mxu0 %v1190_v12 }
 0x9b4   : > { %1555 = vmatprep.subr.mxu0 %v1189_v16 }
 0x9b5   : > { %1556 = vmatpush3.msra.mxu0 %v1189_v16 }
 0xa6e   : > { %v1548_v17 = vpop.f32.mrf.mxu0 }
 0xa6f   : > { %1180 = vrot.lane.b32.xlu1 %v1548_v17, %s1844_s25 }
 0xa70   : > { %v1167_v18 = vpop.f32.mrf.mxu0 }
 0xa71   : > { %1178 = vrot.lane.b32.xlu0 %v1167_v18, %s1844_s25 }
 0xae1   : > { %v1181_v19 = vpop.permute.xlu1 %1180 }
 0xae2   : > { %1186 = vst.msk [vmem:[#allocation2 + $0x8] sm:$0xff] %vm1184_vm7, %v1181_v19 }
 0xae3   : > { %v1179_v20 = vpop.permute.xlu0 %1178 }
 0xae4   : > { %1185 = vst.msk [vmem:[#allocation2] sm:$0xff] %vm1184_vm7, %v1179_v20 }
 0xae9   : > { %v1188_v22 = vld [vmem:[#allocation2 + $0x8] sm:$0xff] }
 0xaeb   : > { %v1187_v21 = vld [vmem:[#allocation2] sm:$0xff] }
 0xaec   : > { %1557 = vmatprep.mubr.msk.f32.mxu0 %vm251_vm0, %v1187_v21 }
 0xaed   : > { %1558 = vmatmul.mubr.msk.f32.vlgmr.msra.gmra.mxu0 %vm251_vm0, %v1188_v22 }
 0xbad   : > { %v1559_v24 = vpop.f32.mrf.mxu0 }
 0xbae   : > { %v1278_v25 = vadd.f32 %v1559_v24, %v1428_v23 }
 0xbaf   : > { %v1272_v26 = vpop.f32.mrf.mxu0 }
 0xbb0   : > { %1282 = vst.msk [vmem:[%s244_s23 + $0x8] sm:$0xff] %vm251_vm0, %v1278_v25  ;;  %v1273_v27 = vadd.f32 %v1428_v23, %v1272_v26 }
 0xbb2   : > { %1281 = vst.msk [vmem:[%s244_s23] sm:$0xff] %vm251_vm0, %v1273_v27 }
 0xbb3   : > { %1769 = shalt.err (!%p1766_p3)
}
 0xbb4   : > { %s1770_s28 = scalar_lea.hbm %s2169_s9, 256  ;;  %s1774_s8 = scalar_lea.hbm %s2218_s4, 512 }
 0xbb5   : > { %p1771_p11 = scmp.ne.s32.totalorder %s2169_s9, %s1770_s28  ;;  %p1775_p4 = scmp.lt.s32.totalorder %s2169_s9, %s2218_s4 }
 0xbb6   : > { %p1776_p6 = scmp.lt.s32.totalorder %s1774_s8, %s1770_s28 }
 0xbb7   : > { %p1772_p9 = pnand %p1771_p11, %p2233_p2 }
 0xbb8   : > { %p1777_p8 = por %p1776_p6, %p1775_p4 }
 0xbb9   : > { %p1773_p1 = pneg %p1772_p9 }
 0xbbb   : > { %p1778_p5 = pnand %p1777_p8, %p1773_p1 }
 0xbbd   : > { %1781 = shalt.err (!%p1778_p5)
}
 0xbbe   : > { %s1846_s5 = smov 128  }
 0xbbf   : > { %1570 = dma.vmem_to_hbm [thread:$0]  (%p2233_p2), %s2163_s30, 256, %s2169_s9, %s1284_s13, %s1846_s5, %s1846_s5, %s1842_s6  }
 0xbc0 PF: > { %s1312_s29 = sand.u32 1, %s1812_s15   ;;  %p2234_p7 = scmp.ne.s32.totalorder %s2224_s22, 0 }
 0xbc1   : > { %p2235_p12 = scmp.ge.s32.totalorder %s1824_s18, 2  ;;  %s1313_s7 = scalar_lea.sflag [#allocation5], %s1312_s29 }
 0xbc3   : > { %p1584_p13 = pnand %p2235_p12, %p2234_p7 }
 0xbc5   : > { %p1585_p0 = pneg %p1584_p13 }
 0xbc7   : > { %1807 = dma.done.wait (%p1585_p0), %s1313_s7, 256  }
 0xbc8   : > { %1809 = vsyncadd (%p1585_p0), %s1313_s7, 4294967040  ;;  %p18_p10 = scmp.ge.s32.totalorder %s1950_s11, 4   ;;  %s2236_s15 = smov %s1816_s16 }
 0xbc9   : > { %s2237_s16 = smov %s1820_s17  ;;  %s2238_s17 = smov %s1966_s20 }
 0xbca   : > { %s2239_s18 = smov %s1950_s11  ;;  %20 = sbr.rel (!%p18_p10) target bundleno = 6 (0x6), region = 89 }
 0xbcf   :  { %1318 = vsyncpa [#allocation4], 1 }
 0xbd0   :  { %1320 = vsyncpa [#allocation4 + $0x1], 1 }
 0xbd1   :  { %1321 = vsyncpa [#allocation7], 1 }
 0xbd2   :  { %1322 = vsyncpa [#allocation5], 1 }
 0xbd3   :  { %1324 = vsyncpa [#allocation5 + $0x1], 1 }

</bundles_post_ra>
